<compile_context>
chip_gen: v5e
topology: v5e:2x2
jax: 0.10.0
libtpu: 0.0.40
codegen_flags: <defaults>
</compile_context>

<pallas_src>
import jax
import jax.numpy as jnp
from jax.experimental import pallas as pl
from jax.experimental.pallas import tpu as pltpu


_SCALAR_EXPAND_WIDTH = 3   # torch .expand((1, 3))
_MAX_TILE_B = 1024         # measured mem-bound roofline plateau (512-1024 rows)
_MIN_GRID_STEPS = 4        # >= 2 pipelined steps per TensorCore on v7x


def _tpu_params():
    """Generation-aware (vmem_capacity, vmem_tile_budget, fast_path_bytes)."""
    try:
        info = pltpu.get_tpu_info()
        vmem_cap = int(info.vmem_capacity_bytes)
    except Exception:  # pragma: no cover - conservative fallback
        vmem_cap = 64 << 20
    # ~1/3 of physical VMEM for the double-buffered working set:
    #   128 MiB parts (v5e/v6e) -> ~42 MiB, 64 MiB parts (v7x) -> ~21 MiB.
    vmem_budget = min(max(vmem_cap // 3, 16 << 20), 44 << 20)
    # Faster HBM on the 64 MiB-VMEM generation (v7x) => XLA concat wins up to
    # a few MiB; older 128 MiB parts keep a smaller threshold.
    fast_path_bytes = (2 << 20) if vmem_cap <= (64 << 20) else (1 << 20)
    return vmem_cap, vmem_budget, fast_path_bytes


def _make_concat_kernel(segments, has_scalars, out_dtype):
    """Kernel: build the full output tile in vregs, store it once (lane-dense).

    segments: tuple of (kind, width, idx); kind in {"scalar", "wide"}.
      "scalar" -> idx indexes the coalesced SMEM scalar array.
      "wide"   -> idx indexes the wide (2-D, VMEM-blocked) input refs.
    """

    def kernel(*refs):
        out_ref = refs[-1]
        if has_scalars:
            sc_ref = refs[0]
            wide_refs = refs[1:-1]
        else:
            sc_ref = None
            wide_refs = refs[:-1]

        rows = out_ref.shape[0]
        parts = []
        for kind, w, idx in segments:
            if kind == "scalar":
                # 0-dim scalar -> .expand((1, 3)): broadcast-fill a 3-wide slab.
                parts.append(jnp.full((rows, w), sc_ref[idx], dtype=out_dtype))
            else:
                parts.append(wide_refs[idx][...].astype(out_dtype))
        if len(parts) == 1:
            out_ref[...] = parts[0]
        else:
            # Single full-width, lane-dense store; shuffles go to the XLU slot.
            out_ref[...] = jnp.concatenate(parts, axis=1)

    return kernel


def preprocess_layer(input_tensors, *, use_pallas=None):
    """Pallas implementation of PreprocessLayer.forward(input_tensors).

    use_pallas: None -> auto (XLA fast path for small outputs), True/False to force.
    """
    segments = []      # (kind, width, idx) in original input order
    wide = []          # 2-D (B, F) tensors
    scalars = []       # 0-dim tensors
    batch = None
    for t in input_tensors:
        t = jnp.asarray(t)
        if t.ndim < 1:
            segments.append(("scalar", _SCALAR_EXPAND_WIDTH, len(scalars)))
            scalars.append(t)
            b = 1
        else:
            assert t.ndim == 2, "cat along dim=1 here assumes 2-D (B, F) inputs"
            segments.append(("wide", t.shape[1], len(wide)))
            wide.append(t)
            b = t.shape[0]
        if batch is None:
            batch = b
        # torch.cat(dim=1) requires matching dim 0 (scalars expand to batch 1).
        assert batch == b, "all tensors must share dim 0 for torch.cat(dim=1)"

    out_dtype = jnp.result_type(*[jnp.asarray(t).dtype for t in input_tensors])
    # TPU has no native 64-bit arithmetic: clamp promotion to 32-bit.
    if out_dtype == jnp.dtype(jnp.float64):
        out_dtype = jnp.dtype(jnp.float32)
    elif out_dtype == jnp.dtype(jnp.int64):
        out_dtype = jnp.dtype(jnp.int32)
    itemsize = jnp.dtype(out_dtype).itemsize
    total = sum(w for _, w, _ in segments)

    vmem_cap, vmem_budget, fast_path_bytes = _tpu_params()

    # ---------------- Fast path: small outputs (includes every scalar case,
    # since scalars force batch == 1). pallas_call fixed overhead dominates. --
    out_bytes = batch * total * itemsize
    if use_pallas is None:
        use_pallas = out_bytes >= fast_path_bytes
    if not use_pallas:
        parts = []
        for kind, w, idx in segments:
            if kind == "scalar":
                parts.append(
                    jnp.broadcast_to(
                        jnp.reshape(scalars[idx], (1, 1)).astype(out_dtype), (1, w)
                    )
                )
            else:
                parts.append(wide[idx].astype(out_dtype))
        return jnp.concatenate(parts, axis=1)

    # ---------------- Pallas path: batch-tiled, pipelined concat copy. -------
    bytes_per_row = (
        sum(t.shape[1] * jnp.dtype(t.dtype).itemsize for t in wide) + total * itemsize
    )
    tile_target = max(1, vmem_budget // (2 * max(1, bytes_per_row)))
    # Keep >= _MIN_GRID_STEPS grid steps so both v7x TensorCores get >=2
    # pipelined steps each (DMA prefetch/writeback overlap).
    tile_b = min(tile_target, _MAX_TILE_B, max(1, pl.cdiv(batch, _MIN_GRID_STEPS)))
    tile_b = min(tile_b, batch)

    # Sublane alignment for the narrowest dtype involved (bf16 packs 2 rows,
    # int8/fp8 pack 4 rows per sublane).
    min_itemsize = min(
        [jnp.dtype(t.dtype).itemsize for t in wide] + [itemsize]
    )
    row_align = {4: 8, 2: 16, 1: 32}.get(min_itemsize, 8)
    if tile_b < batch:
        tile_b = max(row_align, (tile_b // row_align) * row_align)
    grid_steps = pl.cdiv(batch, tile_b)
    grid = (grid_steps,)

    # Small tiles + deep grid: nothing to hide DMA behind -> 3-deep buffering.
    use_triple_buffer = (tile_b < 256) and (grid_steps > 2)

    in_specs = []
    inputs = []
    if scalars:
        # Coalesce all 0-dim scalars into one 32-bit SMEM array (one DMA).
        smem_dtype = (
            jnp.float32 if jnp.issubdtype(out_dtype, jnp.floating) else jnp.int32
        )
        scal_arr = jnp.stack([jnp.reshape(s, ()) for s in scalars]).astype(smem_dtype)
        in_specs.append(pl.BlockSpec(memory_space=pltpu.MemorySpace.SMEM))
        inputs.append(scal_arr)
    for t in wide:
        if use_triple_buffer:
            spec = pl.BlockSpec(
                (tile_b, t.shape[1]),
                lambda i: (i, 0),
                pipeline_mode=pl.Buffered(3),
            )
        else:
            spec = pl.BlockSpec((tile_b, t.shape[1]), lambda i: (i, 0))
        in_specs.append(spec)
        inputs.append(t)

    out_spec = pl.BlockSpec((tile_b, total), lambda i: (i, 0))

    # Tight, computed VMEM limit: working set + headroom, floored at the 16 MiB
    # scoped default, never above half of physical VMEM.
    n_bufs = 3 if use_triple_buffer else 2
    vmem_needed = n_bufs * tile_b * bytes_per_row + (4 << 20)
    vmem_limit = int(min(max(vmem_needed, 16 << 20), max(16 << 20, vmem_cap // 2)))

    kernel = _make_concat_kernel(tuple(segments), bool(scalars), out_dtype)

    return pl.pallas_call(
        kernel,
        out_shape=jax.ShapeDtypeStruct((batch, total), out_dtype),
        grid=grid,
        in_specs=in_specs,
        out_specs=out_spec,
        compiler_params=pltpu.CompilerParams(
            dimension_semantics=("parallel",),  # shard batch tiles across TCs (v7x)
            vmem_limit_bytes=vmem_limit,
        ),
    )(*inputs)


if __name__ == "__main__":
    key = jax.random.PRNGKey(0)
    k0, k1, k2, k3 = jax.random.split(key, 4)

    # --- Case 1: batched 2-D inputs through the Pallas path (forced so the
    #     kernel is exercised on every generation regardless of the auto
    #     fast-path threshold).  B=2048 -> tile_b=512, grid=(4,): >=2 pipelined
    #     steps per v7x TensorCore.  One 128-wide segment + one full-width
    #     single store => lane-dense output writes.
    B = 2048
    a = jax.random.normal(k0, (B, 8), dtype=jnp.float32)
    b = jax.random.normal(k1, (B, 128), dtype=jnp.float32)
    c = jax.random.normal(k2, (B, 40), dtype=jnp.float32)
    out = jax.block_until_ready(preprocess_layer((a, b, c), use_pallas=True))
    ref = jnp.concatenate([a, b, c], axis=1)
    assert out.shape == (B, 176), out.shape
    assert out.dtype == ref.dtype
    assert jnp.array_equal(out, ref), "mismatch vs reference concat (pallas path)"

    # --- Case 2: 0-dim scalar -> expand((1, 3)); tiny output => XLA fast path.
    x0 = jax.random.normal(k3, (1, 8), dtype=jnp.float32)
    s = jnp.float32(0.5)                      # 0-dim scalar
    x2 = jax.random.normal(k0, (1, 16), dtype=jnp.float32)
    ref2 = jnp.concatenate(
        [x0, jnp.broadcast_to(jnp.reshape(s, (1, 1)), (1, 3)), x2], axis=1
    )
    out2 = jax.block_until_ready(preprocess_layer((x0, s, x2)))
    assert out2.shape == (1, 27), out2.shape
    assert jnp.allclose(out2, ref2), "mismatch vs reference (fast path)"

    # --- Case 3: same scalar case forced through the Pallas kernel to verify
    #     the coalesced-SMEM scalar-expand branch + single-store concat.
    out3 = jax.block_until_ready(preprocess_layer((x0, s, x2), use_pallas=True))
    assert out3.shape == (1, 27), out3.shape
    assert jnp.allclose(out3, ref2), "mismatch vs reference (pallas scalar path)"

    print("KERNEL_OK")
</pallas_src>

<mosaic_0001>
module attributes {stable_mosaic.version = 11 : i64} {
  func.func @kernel(%arg0: i32, %arg1: memref<512x8xf32, #tpu.memory_space<vmem>>, %arg2: memref<512x128xf32, #tpu.memory_space<vmem>>, %arg3: memref<512x40xf32, #tpu.memory_space<vmem>>, %arg4: memref<512x176xf32, #tpu.memory_space<vmem>>) attributes {dimension_semantics = [#tpu.dimension_semantics<parallel>], iteration_bounds = array<i64: 4>, scalar_prefetch = 0 : i64, scratch_operands = 0 : i64, tpu.core_type = #tpu.core_type<tc>, window_params = [{transform_indices = @transform_0, window_bounds = array<i64: 512, 8>}, {transform_indices = @transform_1, window_bounds = array<i64: 512, 128>}, {transform_indices = @transform_2, window_bounds = array<i64: 512, 40>}, {transform_indices = @transform_3, window_bounds = array<i64: 512, 176>}]} {
    %c0 = arith.constant 0 : index
    %c0_0 = arith.constant 0 : index
    %0 = vector.load %arg1[%c0, %c0_0] : memref<512x8xf32, #tpu.memory_space<vmem>>, vector<512x8xf32>
    %c0_1 = arith.constant 0 : index
    %c0_2 = arith.constant 0 : index
    %1 = vector.load %arg2[%c0_1, %c0_2] : memref<512x128xf32, #tpu.memory_space<vmem>>, vector<512x128xf32>
    %c0_3 = arith.constant 0 : index
    %c0_4 = arith.constant 0 : index
    %2 = vector.load %arg3[%c0_3, %c0_4] : memref<512x40xf32, #tpu.memory_space<vmem>>, vector<512x40xf32>
    %3 = tpu.concatenate %0, %1, %2 in 1 : vector<512x8xf32>, vector<512x128xf32>, vector<512x40xf32> -> vector<512x176xf32>
    %c0_5 = arith.constant 0 : index
    %c0_6 = arith.constant 0 : index
    %4 = vector.load %arg4[%c0_5, %c0_6] : memref<512x176xf32, #tpu.memory_space<vmem>>, vector<512x176xf32>
    tpu.vector_store %arg4[%c0_5, %c0_6], %3 {strides = array<i32>} : memref<512x176xf32, #tpu.memory_space<vmem>>, vector<512x176xf32>,
    return
  }
  func.func @transform_0(%arg0: i32) -> (i32, i32) {
    %c0_i32 = arith.constant 0 : i32
    %c0_i32_0 = arith.constant 0 : i32
    return %arg0, %c0_i32 : i32, i32
  }
  func.func @transform_1(%arg0: i32) -> (i32, i32) {
    %c0_i32 = arith.constant 0 : i32
    %c0_i32_0 = arith.constant 0 : i32
    return %arg0, %c0_i32 : i32, i32
  }
  func.func @transform_2(%arg0: i32) -> (i32, i32) {
    %c0_i32 = arith.constant 0 : i32
    %c0_i32_0 = arith.constant 0 : i32
    return %arg0, %c0_i32 : i32, i32
  }
  func.func @transform_3(%arg0: i32) -> (i32, i32) {
    %c0_i32 = arith.constant 0 : i32
    %c0_i32_0 = arith.constant 0 : i32
    return %arg0, %c0_i32 : i32, i32
  }
}

</mosaic_0001>

<bundles_post_ra>
// kernel: tpu_custom_call.1
= control target key start
LH: loop header
LB: loop body
LE: loop exit
PB: predicated region body
PF: predicated region fallthrough
CT: control target
= control target key end

     0   :  { %s1319_s12 = smov 0   ;;  %s2255_s0 = inlined_call_operand.vmem [shape: f32[2048,8], index: 0, kind: input, shape index: {}]   ;;  %s2256_s1 = inlined_call_operand.vmem [shape: f32[2048,128], index: 1, kind: input, shape index: {}]   ;;  %s2257_s2 = inlined_call_operand.vmem [shape: f32[2048,40], index: 2, kind: input, shape index: {}]   ;;  %s2258_s3 = inlined_call_operand.vmem [shape: f32[2048,176], index: 3, kind: output, shape index: {}]  }
   0x1 LB: > { %s1264_s13 = sadd.s32 4294967295, %s1296_s12   ;;  %p1268_p0 = scmp.ge.s32.totalorder %s1296_s12, 1  ;;  %s1296_s12 = sphi %s1319_s12, %s13_s12  }
   0x2   : > { %p160_p1 = scmp.lt.s32.totalorder %s1296_s12, 5 }
   0x4   : > { %p161_p2 = pnand %p1268_p0, %p160_p1 }
   0x6   : > { %164 = sbr.rel (%p161_p2) target bundleno = 472 (0x1d8), region = 32 }
   0xb   : > { %s1269_s14 = sshll.u32 %s1264_s13, 6  ;;  %s1298_s19 = smov 8   ;;  %vm924_vm0 = vcmask 64512   ;;  %vm1054_vm1 = vcmask 392192  }
   0xc   : > { %p196_p3 = scmp.lt.s32.totalorder %s1269_s14, 255 }
   0xe   : > { %s2278_s14 = smov (!%p196_p3, %s1269_s14), 255 }
   0xf   : > { %s1330_s15 = sshll.u32 %s2278_s14, 3  ;;  %s1280_s23 = sshll.u32 %s2278_s14, 4 }
  0x10   : > { %s1336_s18 = scalar_lea.vmem %s2256_s1, %s1330_s15  ;;  %s1411_s22 = scalar_lea.vmem %s2255_s0, %s1330_s15 }
  0x11   : > { %v288_v0 = vld [vmem:[%s1336_s18 + $0x20] sm:$0xff]  ;;  %v286_v1 = vld [vmem:[%s1336_s18 + $0x10] sm:$0xff]  ;;  %v289_v3 = vld [vmem:[%s1336_s18 + $0x28] sm:$0xff]  ;;  %s1423_s26 = scalar_lea.vmem %s2258_s3, %s1280_s23  ;;  %s1613_s29 = scalar_lea.vmem %s2257_s2, %s1330_s15 }
  0x12   : > { %v284_v2 = vld [vmem:[%s1336_s18] sm:$0xff]  ;;  %484 = vrot.lane.b32.xlu2 %v288_v0, %s1298_s19  ;;  %480 = vrot.lane.b32.xlu1 %v286_v1, %s1298_s19  ;;  %v287_v4 = vld [vmem:[%s1336_s18 + $0x18] sm:$0xff] }
  0x13   : > { %476 = vrot.lane.b32.xlu0 %v284_v2, %s1298_s19  ;;  %v285_v5 = vld [vmem:[%s1336_s18 + $0x8] sm:$0xff]  ;;  %v292_v6 = vld [vmem:[%s1336_s18 + $0x40] sm:$0xff]  ;;  %v291_v7 = vld [vmem:[%s1336_s18 + $0x38] sm:$0xff] }
  0x14   : > { %v290_v8 = vld [vmem:[%s1336_s18 + $0x30] sm:$0xff]  ;;  %v295_v9 = vld [vmem:[%s1336_s18 + $0x58] sm:$0xff]  ;;  %v293_v11 = vld [vmem:[%s1336_s18 + $0x48] sm:$0xff] }
  0x15   : > { %v294_v10 = vld [vmem:[%s1336_s18 + $0x50] sm:$0xff]  ;;  %v297_v13 = vld [vmem:[%s1336_s18 + $0x68] sm:$0xff]  ;;  %v296_v14 = vld [vmem:[%s1336_s18 + $0x60] sm:$0xff] }
  0x16   : > { %v298_v12 = vld [vmem:[%s1336_s18 + $0x70] sm:$0xff]  ;;  %v301_v15 = vld [vmem:[%s1336_s18 + $0x88] sm:$0xff]  ;;  %v300_v16 = vld [vmem:[%s1336_s18 + $0x80] sm:$0xff] }
  0x17   : > { %v299_v17 = vld [vmem:[%s1336_s18 + $0x78] sm:$0xff]  ;;  %v304_v18 = vld [vmem:[%s1336_s18 + $0xa0] sm:$0xff]  ;;  %v302_v20 = vld [vmem:[%s1336_s18 + $0x90] sm:$0xff] }
  0x18   : > { %v303_v19 = vld [vmem:[%s1336_s18 + $0x98] sm:$0xff]  ;;  %v306_v22 = vld [vmem:[%s1336_s18 + $0xb0] sm:$0xff]  ;;  %v305_v23 = vld [vmem:[%s1336_s18 + $0xa8] sm:$0xff] }
  0x19   : > { %v307_v21 = vld [vmem:[%s1336_s18 + $0xb8] sm:$0xff]  ;;  %v310_v24 = vld [vmem:[%s1336_s18 + $0xd0] sm:$0xff]  ;;  %v309_v25 = vld [vmem:[%s1336_s18 + $0xc8] sm:$0xff] }
  0x1a   : > { %486 = vrot.lane.b32.xlu2 %v289_v3, %s1298_s19  ;;  %482 = vrot.lane.b32.xlu1 %v287_v4, %s1298_s19  ;;  %v308_v26 = vld [vmem:[%s1336_s18 + $0xc0] sm:$0xff]  ;;  %v313_v27 = vld [vmem:[%s1336_s18 + $0xe8] sm:$0xff] }
  0x1b   : > { %478 = vrot.lane.b32.xlu0 %v285_v5, %s1298_s19  ;;  %v312_v28 = vld [vmem:[%s1336_s18 + $0xe0] sm:$0xff]  ;;  %v311_v29 = vld [vmem:[%s1336_s18 + $0xd8] sm:$0xff]  ;;  %v314_v32 = vld [vmem:[%s1336_s18 + $0xf0] sm:$0xff] }
  0x1c   : > { %v316_v30 = vld [vmem:[%s1336_s18 + $0x100] sm:$0xff]  ;;  %v315_v31 = vld [vmem:[%s1336_s18 + $0xf8] sm:$0xff]  ;;  %v318_v34 = vld [vmem:[%s1336_s18 + $0x110] sm:$0xff] }
  0x1d   : > { %v319_v33 = vld [vmem:[%s1336_s18 + $0x118] sm:$0xff]  ;;  %v317_v35 = vld [vmem:[%s1336_s18 + $0x108] sm:$0xff]  ;;  %v224_v36 = vld [vmem:[%s1411_s22 + $0x20] sm:$0xff] }
  0x1e   : > { %v322_v39 = vld [vmem:[%s1336_s18 + $0x130] sm:$0xff]  ;;  %v321_v40 = vld [vmem:[%s1336_s18 + $0x128] sm:$0xff]  ;;  %v320_v41 = vld [vmem:[%s1336_s18 + $0x120] sm:$0xff] }
  0x1f   : > { %v225_v42 = vld [vmem:[%s1411_s22 + $0x28] sm:$0xff]  ;;  %v324_v46 = vld [vmem:[%s1336_s18 + $0x140] sm:$0xff]  ;;  %v323_v47 = vld [vmem:[%s1336_s18 + $0x138] sm:$0xff] }
  0x20   : > { %v325_v45 = vld [vmem:[%s1336_s18 + $0x148] sm:$0xff]  ;;  %v228_v48 = vld [vmem:[%s1411_s22 + $0x40] sm:$0xff]  ;;  %v327_v52 = vld [vmem:[%s1336_s18 + $0x158] sm:$0xff] }
  0x21   : > { %v328_v51 = vld [vmem:[%s1336_s18 + $0x160] sm:$0xff]  ;;  %v326_v53 = vld [vmem:[%s1336_s18 + $0x150] sm:$0xff]  ;;  %v231_v54 = vld [vmem:[%s1411_s22 + $0x58] sm:$0xff] }
  0x22   : > { %492 = vrot.lane.b32.xlu2 %v292_v6, %s1298_s19  ;;  %490 = vrot.lane.b32.xlu1 %v291_v7, %s1298_s19  ;;  %v222_v55 = vld [vmem:[%s1411_s22 + $0x10] sm:$0xff]  ;;  %v220_v56 = vld [vmem:[%s1411_s22] sm:$0xff] }
  0x23   : > { %488 = vrot.lane.b32.xlu0 %v290_v8, %s1298_s19  ;;  %v331_v63 = vld [vmem:[%s1336_s18 + $0x178] sm:$0xff]  ;;  %v330_v0 = vld [vmem:[%s1336_s18 + $0x170] sm:$0xff]  ;;  %v329_v1 = vld [vmem:[%s1336_s18 + $0x168] sm:$0xff] }
  0x24   : > { %v234_v2 = vld [vmem:[%s1411_s22 + $0x70] sm:$0xff]  ;;  %v223_v3 = vld [vmem:[%s1411_s22 + $0x18] sm:$0xff]  ;;  %v221_v4 = vld [vmem:[%s1411_s22 + $0x8] sm:$0xff] }
  0x2a   : > { %498 = vrot.lane.b32.xlu2 %v295_v9, %s1298_s19  ;;  %496 = vrot.lane.b32.xlu1 %v294_v10, %s1298_s19 }
  0x2b   : > { %494 = vrot.lane.b32.xlu0 %v293_v11, %s1298_s19  ;;  %v334_v11 = vld [vmem:[%s1336_s18 + $0x190] sm:$0xff] }
  0x32   : > { %504 = vrot.lane.b32.xlu2 %v298_v12, %s1298_s19  ;;  %502 = vrot.lane.b32.xlu1 %v297_v13, %s1298_s19  ;;  %v333_v12 = vld [vmem:[%s1336_s18 + $0x188] sm:$0xff]  ;;  %v332_v13 = vld [vmem:[%s1336_s18 + $0x180] sm:$0xff] }
  0x33   : > { %500 = vrot.lane.b32.xlu0 %v296_v14, %s1298_s19  ;;  %v237_v14 = vld [vmem:[%s1411_s22 + $0x88] sm:$0xff] }
  0x3a   : > { %510 = vrot.lane.b32.xlu2 %v301_v15, %s1298_s19  ;;  %508 = vrot.lane.b32.xlu1 %v300_v16, %s1298_s19  ;;  %v227_v15 = vld [vmem:[%s1411_s22 + $0x38] sm:$0xff]  ;;  %v226_v16 = vld [vmem:[%s1411_s22 + $0x30] sm:$0xff] }
  0x3b   : > { %506 = vrot.lane.b32.xlu0 %v299_v17, %s1298_s19 }
  0x42   : > { %516 = vrot.lane.b32.xlu2 %v304_v18, %s1298_s19  ;;  %514 = vrot.lane.b32.xlu1 %v303_v19, %s1298_s19 }
  0x43   : > { %512 = vrot.lane.b32.xlu0 %v302_v20, %s1298_s19 }
  0x4a   : > { %522 = vrot.lane.b32.xlu2 %v307_v21, %s1298_s19  ;;  %520 = vrot.lane.b32.xlu1 %v306_v22, %s1298_s19 }
  0x4b   : > { %518 = vrot.lane.b32.xlu0 %v305_v23, %s1298_s19  ;;  %v337_v23 = vld [vmem:[%s1336_s18 + $0x1a8] sm:$0xff] }
  0x52   : > { %528 = vrot.lane.b32.xlu2 %v310_v24, %s1298_s19  ;;  %526 = vrot.lane.b32.xlu1 %v309_v25, %s1298_s19  ;;  %v336_v24 = vld [vmem:[%s1336_s18 + $0x1a0] sm:$0xff]  ;;  %v335_v25 = vld [vmem:[%s1336_s18 + $0x198] sm:$0xff] }
  0x53   : > { %524 = vrot.lane.b32.xlu0 %v308_v26, %s1298_s19  ;;  %v240_v26 = vld [vmem:[%s1411_s22 + $0xa0] sm:$0xff] }
  0x5a   : > { %534 = vrot.lane.b32.xlu2 %v313_v27, %s1298_s19  ;;  %532 = vrot.lane.b32.xlu1 %v312_v28, %s1298_s19  ;;  %v230_v27 = vld [vmem:[%s1411_s22 + $0x50] sm:$0xff]  ;;  %v229_v28 = vld [vmem:[%s1411_s22 + $0x48] sm:$0xff] }
  0x5b   : > { %530 = vrot.lane.b32.xlu0 %v311_v29, %s1298_s19 }
  0x62   : > { %540 = vrot.lane.b32.xlu2 %v316_v30, %s1298_s19  ;;  %538 = vrot.lane.b32.xlu1 %v315_v31, %s1298_s19 }
  0x63   : > { %536 = vrot.lane.b32.xlu0 %v314_v32, %s1298_s19 }
  0x6a   : > { %546 = vrot.lane.b32.xlu2 %v319_v33, %s1298_s19  ;;  %544 = vrot.lane.b32.xlu1 %v318_v34, %s1298_s19 }
  0x6b   : > { %542 = vrot.lane.b32.xlu0 %v317_v35, %s1298_s19  ;;  %v340_v35 = vld [vmem:[%s1336_s18 + $0x1c0] sm:$0xff] }
  0x6c   : > { %v1418_v37 = vpop.permute.xlu2 %484 }
  0x6d   : > { %v929_v38 = vsel %vm924_vm0, %v224_v36, %v1418_v37  ;;  %v339_v36 = vld [vmem:[%s1336_s18 + $0x1b8] sm:$0xff] }
  0x6e   : > { %1062 = vst [vmem:[%s1423_s26 + $0x40] sm:$0xff] %v929_v38  ;;  %v338_v38 = vld [vmem:[%s1336_s18 + $0x1b0] sm:$0xff] }
  0x72   : > { %552 = vrot.lane.b32.xlu2 %v322_v39, %s1298_s19  ;;  %550 = vrot.lane.b32.xlu1 %v321_v40, %s1298_s19  ;;  %v243_v39 = vld [vmem:[%s1411_s22 + $0xb8] sm:$0xff]  ;;  %v233_v40 = vld [vmem:[%s1411_s22 + $0x68] sm:$0xff] }
  0x73   : > { %548 = vrot.lane.b32.xlu0 %v320_v41, %s1298_s19  ;;  %v232_v41 = vld [vmem:[%s1411_s22 + $0x60] sm:$0xff] }
  0x74   : > { %v1435_v43 = vpop.permute.xlu2 %486 }
  0x75   : > { %v930_v44 = vsel %vm924_vm0, %v225_v42, %v1435_v43 }
  0x76   : > { %1064 = vst [vmem:[%s1423_s26 + $0x50] sm:$0xff] %v930_v44 }
  0x7a   : > { %558 = vrot.lane.b32.xlu2 %v325_v45, %s1298_s19  ;;  %556 = vrot.lane.b32.xlu1 %v324_v46, %s1298_s19 }
  0x7b   : > { %554 = vrot.lane.b32.xlu0 %v323_v47, %s1298_s19 }
  0x7c   : > { %v1447_v49 = vpop.permute.xlu2 %492 }
  0x7d   : > { %v933_v50 = vsel %vm924_vm0, %v228_v48, %v1447_v49 }
  0x7e   : > { %1070 = vst [vmem:[%s1423_s26 + $0x80] sm:$0xff] %v933_v50  ;;  %v343_v50 = vld [vmem:[%s1336_s18 + $0x1d8] sm:$0xff] }
  0x82   : > { %564 = vrot.lane.b32.xlu2 %v328_v51, %s1298_s19  ;;  %562 = vrot.lane.b32.xlu1 %v327_v52, %s1298_s19  ;;  %v342_v51 = vld [vmem:[%s1336_s18 + $0x1d0] sm:$0xff]  ;;  %v341_v52 = vld [vmem:[%s1336_s18 + $0x1c8] sm:$0xff] }
  0x83   : > { %560 = vrot.lane.b32.xlu0 %v326_v53, %s1298_s19  ;;  %v246_v53 = vld [vmem:[%s1411_s22 + $0xd0] sm:$0xff] }
  0x84   : > { %v1461_v57 = vpop.permute.xlu2 %498  ;;  %v1463_v58 = vpop.permute.xlu1 %480 }
  0x85   : > { %v936_v59 = vsel %vm924_vm0, %v231_v54, %v1461_v57  ;;  %v927_v60 = vsel %vm924_vm0, %v222_v55, %v1463_v58  ;;  %v1469_v61 = vpop.permute.xlu0 %476  ;;  %v236_v54 = vld [vmem:[%s1411_s22 + $0x80] sm:$0xff]  ;;  %v235_v55 = vld [vmem:[%s1411_s22 + $0x78] sm:$0xff] }
  0x86   : > { %1076 = vst [vmem:[%s1423_s26 + $0xb0] sm:$0xff] %v936_v59  ;;  %v925_v62 = vsel %vm924_vm0, %v220_v56, %v1469_v61 }
  0x87   : > { %1058 = vst [vmem:[%s1423_s26 + $0x20] sm:$0xff] %v927_v60 }
  0x88   : > { %1053 = vst [vmem:[%s1423_s26] sm:$0xff] %v925_v62 }
  0x8a   : > { %570 = vrot.lane.b32.xlu2 %v331_v63, %s1298_s19  ;;  %568 = vrot.lane.b32.xlu1 %v330_v0, %s1298_s19 }
  0x8b   : > { %566 = vrot.lane.b32.xlu0 %v329_v1, %s1298_s19  ;;  %v346_v1 = vld [vmem:[%s1336_s18 + $0x1f0] sm:$0xff] }
  0x8c   : > { %v1485_v5 = vpop.permute.xlu2 %504  ;;  %v1487_v6 = vpop.permute.xlu1 %482 }
  0x8d   : > { %v939_v7 = vsel %vm924_vm0, %v234_v2, %v1485_v5  ;;  %v928_v8 = vsel %vm924_vm0, %v223_v3, %v1487_v6  ;;  %v1493_v9 = vpop.permute.xlu0 %478  ;;  %v345_v2 = vld [vmem:[%s1336_s18 + $0x1e8] sm:$0xff]  ;;  %v344_v3 = vld [vmem:[%s1336_s18 + $0x1e0] sm:$0xff] }
  0x8e   : > { %1082 = vst [vmem:[%s1423_s26 + $0xe0] sm:$0xff] %v939_v7  ;;  %v926_v10 = vsel %vm924_vm0, %v221_v4, %v1493_v9  ;;  %v249_v4 = vld [vmem:[%s1411_s22 + $0xe8] sm:$0xff]  ;;  %v239_v7 = vld [vmem:[%s1411_s22 + $0x98] sm:$0xff] }
  0x8f   : > { %1060 = vst [vmem:[%s1423_s26 + $0x30] sm:$0xff] %v928_v8  ;;  %v238_v8 = vld [vmem:[%s1411_s22 + $0x90] sm:$0xff] }
  0x90   : > { %1056 = vst [vmem:[%s1423_s26 + $0x10] sm:$0xff] %v926_v10 }
  0x92   : > { %576 = vrot.lane.b32.xlu2 %v334_v11, %s1298_s19  ;;  %574 = vrot.lane.b32.xlu1 %v333_v12, %s1298_s19 }
  0x93   : > { %572 = vrot.lane.b32.xlu0 %v332_v13, %s1298_s19 }
  0x94   : > { %v1509_v17 = vpop.permute.xlu2 %510  ;;  %v1511_v18 = vpop.permute.xlu1 %490 }
  0x95   : > { %v942_v19 = vsel %vm924_vm0, %v237_v14, %v1509_v17  ;;  %v932_v20 = vsel %vm924_vm0, %v227_v15, %v1511_v18  ;;  %v1517_v21 = vpop.permute.xlu0 %488 }
  0x96   : > { %1088 = vst [vmem:[%s1423_s26 + $0x110] sm:$0xff] %v942_v19  ;;  %v931_v22 = vsel %vm924_vm0, %v226_v16, %v1517_v21  ;;  %v349_v16 = vld [vmem:[%s1613_s29 + $0x8] sm:$0xff]  ;;  %v348_v19 = vld [vmem:[%s1613_s29] sm:$0xff] }
  0x97   : > { %1068 = vst [vmem:[%s1423_s26 + $0x70] sm:$0xff] %v932_v20  ;;  %v347_v20 = vld [vmem:[%s1336_s18 + $0x1f8] sm:$0xff] }
  0x98   : > { %1066 = vst [vmem:[%s1423_s26 + $0x60] sm:$0xff] %v931_v22  ;;  %v252_v22 = vld [vmem:[%s1411_s22 + $0x100] sm:$0xff] }
  0x9a   : > { %582 = vrot.lane.b32.xlu2 %v337_v23, %s1298_s19  ;;  %580 = vrot.lane.b32.xlu1 %v336_v24, %s1298_s19  ;;  %v242_v23 = vld [vmem:[%s1411_s22 + $0xb0] sm:$0xff]  ;;  %v241_v24 = vld [vmem:[%s1411_s22 + $0xa8] sm:$0xff] }
  0x9b   : > { %578 = vrot.lane.b32.xlu0 %v335_v25, %s1298_s19 }
  0x9c   : > { %v1533_v29 = vpop.permute.xlu2 %516  ;;  %v1535_v30 = vpop.permute.xlu1 %496 }
  0x9d   : > { %v945_v31 = vsel %vm924_vm0, %v240_v26, %v1533_v29  ;;  %v935_v32 = vsel %vm924_vm0, %v230_v27, %v1535_v30  ;;  %v1541_v33 = vpop.permute.xlu0 %494 }
  0x9e   : > { %1094 = vst [vmem:[%s1423_s26 + $0x140] sm:$0xff] %v945_v31  ;;  %v934_v34 = vsel %vm924_vm0, %v229_v28, %v1541_v33 }
  0x9f   : > { %1074 = vst [vmem:[%s1423_s26 + $0xa0] sm:$0xff] %v935_v32 }
  0xa0   : > { %1072 = vst [vmem:[%s1423_s26 + $0x90] sm:$0xff] %v934_v34  ;;  %v352_v34 = vld [vmem:[%s1613_s29 + $0x20] sm:$0xff] }
  0xa2   : > { %588 = vrot.lane.b32.xlu2 %v340_v35, %s1298_s19  ;;  %586 = vrot.lane.b32.xlu1 %v339_v36, %s1298_s19  ;;  %v351_v35 = vld [vmem:[%s1613_s29 + $0x18] sm:$0xff]  ;;  %v350_v36 = vld [vmem:[%s1613_s29 + $0x10] sm:$0xff] }
  0xa3   : > { %584 = vrot.lane.b32.xlu0 %v338_v38, %s1298_s19  ;;  %v255_v38 = vld [vmem:[%s1411_s22 + $0x118] sm:$0xff] }
  0xa4   : > { %v1557_v42 = vpop.permute.xlu2 %522  ;;  %v1559_v44 = vpop.permute.xlu1 %502 }
  0xa5   : > { %v948_v45 = vsel %vm924_vm0, %v243_v39, %v1557_v42  ;;  %v938_v46 = vsel %vm924_vm0, %v233_v40, %v1559_v44  ;;  %v1565_v47 = vpop.permute.xlu0 %500  ;;  %v245_v39 = vld [vmem:[%s1411_s22 + $0xc8] sm:$0xff]  ;;  %v244_v40 = vld [vmem:[%s1411_s22 + $0xc0] sm:$0xff] }
  0xa6   : > { %1100 = vst [vmem:[%s1423_s26 + $0x170] sm:$0xff] %v948_v45  ;;  %v937_v48 = vsel %vm924_vm0, %v232_v41, %v1565_v47 }
  0xa7   : > { %1080 = vst [vmem:[%s1423_s26 + $0xd0] sm:$0xff] %v938_v46 }
  0xa8   : > { %1078 = vst [vmem:[%s1423_s26 + $0xc0] sm:$0xff] %v937_v48 }
  0xaa   : > { %594 = vrot.lane.b32.xlu2 %v343_v50, %s1298_s19  ;;  %592 = vrot.lane.b32.xlu1 %v342_v51, %s1298_s19 }
  0xab   : > { %590 = vrot.lane.b32.xlu0 %v341_v52, %s1298_s19  ;;  %v355_v52 = vld [vmem:[%s1613_s29 + $0x38] sm:$0xff] }
  0xac   : > { %v1581_v56 = vpop.permute.xlu2 %528  ;;  %v1583_v59 = vpop.permute.xlu1 %508 }
  0xad   : > { %v951_v60 = vsel %vm924_vm0, %v246_v53, %v1581_v56  ;;  %v941_v62 = vsel %vm924_vm0, %v236_v54, %v1583_v59  ;;  %v1589_v63 = vpop.permute.xlu0 %506  ;;  %v354_v53 = vld [vmem:[%s1613_s29 + $0x30] sm:$0xff]  ;;  %v353_v54 = vld [vmem:[%s1613_s29 + $0x28] sm:$0xff] }
  0xae   : > { %1106 = vst [vmem:[%s1423_s26 + $0x1a0] sm:$0xff] %v951_v60  ;;  %v940_v0 = vsel %vm924_vm0, %v235_v55, %v1589_v63  ;;  %v258_v55 = vld [vmem:[%s1411_s22 + $0x130] sm:$0xff]  ;;  %v248_v60 = vld [vmem:[%s1411_s22 + $0xe0] sm:$0xff] }
  0xaf   : > { %1086 = vst [vmem:[%s1423_s26 + $0x100] sm:$0xff] %v941_v62  ;;  %v247_v62 = vld [vmem:[%s1411_s22 + $0xd8] sm:$0xff] }
  0xb0   : > { %1084 = vst [vmem:[%s1423_s26 + $0xf0] sm:$0xff] %v940_v0 }
  0xb2   : > { %600 = vrot.lane.b32.xlu2 %v346_v1, %s1298_s19  ;;  %598 = vrot.lane.b32.xlu1 %v345_v2, %s1298_s19 }
  0xb3   : > { %596 = vrot.lane.b32.xlu0 %v344_v3, %s1298_s19 }
  0xb4   : > { %v1605_v10 = vpop.permute.xlu2 %534  ;;  %v1607_v11 = vpop.permute.xlu1 %514 }
  0xb5   : > { %v954_v12 = vsel %vm924_vm0, %v249_v4, %v1605_v10  ;;  %v944_v13 = vsel %vm924_vm0, %v239_v7, %v1607_v11  ;;  %v1619_v14 = vpop.permute.xlu0 %512 }
  0xb6   : > { %1112 = vst [vmem:[%s1423_s26 + $0x1d0] sm:$0xff] %v954_v12  ;;  %v943_v15 = vsel %vm924_vm0, %v238_v8, %v1619_v14  ;;  %v358_v8 = vld [vmem:[%s1613_s29 + $0x50] sm:$0xff]  ;;  %v357_v12 = vld [vmem:[%s1613_s29 + $0x48] sm:$0xff] }
  0xb7   : > { %1092 = vst [vmem:[%s1423_s26 + $0x130] sm:$0xff] %v944_v13  ;;  %v356_v13 = vld [vmem:[%s1613_s29 + $0x40] sm:$0xff] }
  0xb8   : > { %1090 = vst [vmem:[%s1423_s26 + $0x120] sm:$0xff] %v943_v15  ;;  %v261_v15 = vld [vmem:[%s1411_s22 + $0x148] sm:$0xff] }
  0xba   : > { %734 = vrot.lane.b32.xlu2 %v349_v16, %s1298_s19  ;;  %732 = vrot.lane.b32.xlu1 %v348_v19, %s1298_s19  ;;  %v251_v16 = vld [vmem:[%s1411_s22 + $0xf8] sm:$0xff]  ;;  %v250_v19 = vld [vmem:[%s1411_s22 + $0xf0] sm:$0xff] }
  0xbb   : > { %602 = vrot.lane.b32.xlu0 %v347_v20, %s1298_s19 }
  0xbc   : > { %v1635_v25 = vpop.permute.xlu2 %540  ;;  %v1637_v26 = vpop.permute.xlu1 %520 }
  0xbd   : > { %v957_v27 = vsel %vm924_vm0, %v252_v22, %v1635_v25  ;;  %v947_v28 = vsel %vm924_vm0, %v242_v23, %v1637_v26  ;;  %v1643_v31 = vpop.permute.xlu0 %518 }
  0xbe   : > { %1118 = vst [vmem:[%s1423_s26 + $0x200] sm:$0xff] %v957_v27  ;;  %v946_v32 = vsel %vm924_vm0, %v241_v24, %v1643_v31 }
  0xbf   : > { %1098 = vst [vmem:[%s1423_s26 + $0x160] sm:$0xff] %v947_v28 }
  0xc0   : > { %1096 = vst [vmem:[%s1423_s26 + $0x150] sm:$0xff] %v946_v32  ;;  %v361_v32 = vld [vmem:[%s1613_s29 + $0x68] sm:$0xff] }
  0xc2   : > { %740 = vrot.lane.b32.xlu2 %v352_v34, %s1298_s19  ;;  %738 = vrot.lane.b32.xlu1 %v351_v35, %s1298_s19  ;;  %v360_v34 = vld [vmem:[%s1613_s29 + $0x60] sm:$0xff]  ;;  %v359_v35 = vld [vmem:[%s1613_s29 + $0x58] sm:$0xff] }
  0xc3   : > { %736 = vrot.lane.b32.xlu0 %v350_v36, %s1298_s19  ;;  %v264_v36 = vld [vmem:[%s1411_s22 + $0x160] sm:$0xff] }
  0xc4   : > { %v1659_v41 = vpop.permute.xlu2 %546  ;;  %v1661_v45 = vpop.permute.xlu1 %526 }
  0xc5   : > { %v960_v46 = vsel %vm924_vm0, %v255_v38, %v1659_v41  ;;  %v950_v48 = vsel %vm924_vm0, %v245_v39, %v1661_v45  ;;  %v1667_v50 = vpop.permute.xlu0 %524  ;;  %v254_v38 = vld [vmem:[%s1411_s22 + $0x110] sm:$0xff]  ;;  %v253_v39 = vld [vmem:[%s1411_s22 + $0x108] sm:$0xff] }
  0xc6   : > { %1124 = vst [vmem:[%s1423_s26 + $0x230] sm:$0xff] %v960_v46  ;;  %v949_v51 = vsel %vm924_vm0, %v244_v40, %v1667_v50 }
  0xc7   : > { %1104 = vst [vmem:[%s1423_s26 + $0x190] sm:$0xff] %v950_v48 }
  0xc8   : > { %1102 = vst [vmem:[%s1423_s26 + $0x180] sm:$0xff] %v949_v51 }
  0xca   : > { %746 = vrot.lane.b32.xlu2 %v355_v52, %s1298_s19  ;;  %744 = vrot.lane.b32.xlu1 %v354_v53, %s1298_s19 }
  0xcb   : > { %742 = vrot.lane.b32.xlu0 %v353_v54, %s1298_s19  ;;  %v364_v54 = vld [vmem:[%s1613_s29 + $0x80] sm:$0xff] }
  0xcc   : > { %v1683_v0 = vpop.permute.xlu2 %552  ;;  %v1685_v1 = vpop.permute.xlu1 %532 }
  0xcd   : > { %v963_v2 = vsel %vm924_vm0, %v258_v55, %v1683_v0  ;;  %v953_v3 = vsel %vm924_vm0, %v248_v60, %v1685_v1  ;;  %v1691_v4 = vpop.permute.xlu0 %530  ;;  %v363_v55 = vld [vmem:[%s1613_s29 + $0x78] sm:$0xff]  ;;  %v362_v60 = vld [vmem:[%s1613_s29 + $0x70] sm:$0xff] }
  0xce   : > { %1130 = vst [vmem:[%s1423_s26 + $0x260] sm:$0xff] %v963_v2  ;;  %v952_v7 = vsel %vm924_vm0, %v247_v62, %v1691_v4  ;;  %v267_v62 = vld [vmem:[%s1411_s22 + $0x178] sm:$0xff]  ;;  %v257_v2 = vld [vmem:[%s1411_s22 + $0x128] sm:$0xff] }
  0xcf   : > { %1110 = vst [vmem:[%s1423_s26 + $0x1c0] sm:$0xff] %v953_v3  ;;  %v256_v3 = vld [vmem:[%s1411_s22 + $0x120] sm:$0xff] }
  0xd0   : > { %1108 = vst [vmem:[%s1423_s26 + $0x1b0] sm:$0xff] %v952_v7 }
  0xd2   : > { %752 = vrot.lane.b32.xlu2 %v358_v8, %s1298_s19  ;;  %750 = vrot.lane.b32.xlu1 %v357_v12, %s1298_s19 }
  0xd3   : > { %748 = vrot.lane.b32.xlu0 %v356_v13, %s1298_s19 }
  0xd4   : > { %v1707_v20 = vpop.permute.xlu2 %558  ;;  %v1709_v22 = vpop.permute.xlu1 %538 }
  0xd5   : > { %v966_v23 = vsel %vm924_vm0, %v261_v15, %v1707_v20  ;;  %v956_v24 = vsel %vm924_vm0, %v251_v16, %v1709_v22  ;;  %v1715_v27 = vpop.permute.xlu0 %536 }
  0xd6   : > { %1136 = vst [vmem:[%s1423_s26 + $0x290] sm:$0xff] %v966_v23  ;;  %v955_v28 = vsel %vm924_vm0, %v250_v19, %v1715_v27  ;;  %v367_v19 = vld [vmem:[%s1613_s29 + $0x98] sm:$0xff]  ;;  %v366_v23 = vld [vmem:[%s1613_s29 + $0x90] sm:$0xff] }
  0xd7   : > { %1116 = vst [vmem:[%s1423_s26 + $0x1f0] sm:$0xff] %v956_v24  ;;  %v365_v24 = vld [vmem:[%s1613_s29 + $0x88] sm:$0xff] }
  0xd8   : > { %1114 = vst [vmem:[%s1423_s26 + $0x1e0] sm:$0xff] %v955_v28  ;;  %v270_v28 = vld [vmem:[%s1411_s22 + $0x190] sm:$0xff] }
  0xda   : > { %758 = vrot.lane.b32.xlu2 %v361_v32, %s1298_s19  ;;  %756 = vrot.lane.b32.xlu1 %v360_v34, %s1298_s19  ;;  %v260_v32 = vld [vmem:[%s1411_s22 + $0x140] sm:$0xff]  ;;  %v259_v34 = vld [vmem:[%s1411_s22 + $0x138] sm:$0xff] }
  0xdb   : > { %754 = vrot.lane.b32.xlu0 %v359_v35, %s1298_s19 }
  0xdc   : > { %v1731_v40 = vpop.permute.xlu2 %564  ;;  %v1733_v46 = vpop.permute.xlu1 %544 }
  0xdd   : > { %v969_v48 = vsel %vm924_vm0, %v264_v36, %v1731_v40  ;;  %v959_v51 = vsel %vm924_vm0, %v254_v38, %v1733_v46  ;;  %v1739_v52 = vpop.permute.xlu0 %542 }
  0xde   : > { %1142 = vst [vmem:[%s1423_s26 + $0x2c0] sm:$0xff] %v969_v48  ;;  %v958_v53 = vsel %vm924_vm0, %v253_v39, %v1739_v52 }
  0xdf   : > { %1122 = vst [vmem:[%s1423_s26 + $0x220] sm:$0xff] %v959_v51 }
  0xe0   : > { %1120 = vst [vmem:[%s1423_s26 + $0x210] sm:$0xff] %v958_v53  ;;  %v370_v53 = vld [vmem:[%s1613_s29 + $0xb0] sm:$0xff] }
  0xe2   : > { %764 = vrot.lane.b32.xlu2 %v364_v54, %s1298_s19  ;;  %762 = vrot.lane.b32.xlu1 %v363_v55, %s1298_s19  ;;  %v369_v54 = vld [vmem:[%s1613_s29 + $0xa8] sm:$0xff]  ;;  %v368_v55 = vld [vmem:[%s1613_s29 + $0xa0] sm:$0xff] }
  0xe3   : > { %760 = vrot.lane.b32.xlu0 %v362_v60, %s1298_s19  ;;  %v273_v60 = vld [vmem:[%s1411_s22 + $0x1a8] sm:$0xff] }
  0xe4   : > { %v1755_v7 = vpop.permute.xlu2 %570  ;;  %v1757_v8 = vpop.permute.xlu1 %550 }
  0xe5   : > { %v972_v12 = vsel %vm924_vm0, %v267_v62, %v1755_v7  ;;  %v962_v13 = vsel %vm924_vm0, %v257_v2, %v1757_v8  ;;  %v1763_v15 = vpop.permute.xlu0 %548  ;;  %v263_v62 = vld [vmem:[%s1411_s22 + $0x158] sm:$0xff]  ;;  %v262_v2 = vld [vmem:[%s1411_s22 + $0x150] sm:$0xff] }
  0xe6   : > { %1148 = vst [vmem:[%s1423_s26 + $0x2f0] sm:$0xff] %v972_v12  ;;  %v961_v16 = vsel %vm924_vm0, %v256_v3, %v1763_v15 }
  0xe7   : > { %1128 = vst [vmem:[%s1423_s26 + $0x250] sm:$0xff] %v962_v13 }
  0xe8   : > { %1126 = vst [vmem:[%s1423_s26 + $0x240] sm:$0xff] %v961_v16 }
  0xea   : > { %770 = vrot.lane.b32.xlu2 %v367_v19, %s1298_s19  ;;  %768 = vrot.lane.b32.xlu1 %v366_v23, %s1298_s19 }
  0xeb   : > { %766 = vrot.lane.b32.xlu0 %v365_v24, %s1298_s19  ;;  %v373_v24 = vld [vmem:[%s1613_s29 + $0xc8] sm:$0xff] }
  0xec   : > { %v1779_v35 = vpop.permute.xlu2 %576  ;;  %v1781_v36 = vpop.permute.xlu1 %556 }
  0xed   : > { %v975_v38 = vsel %vm924_vm0, %v270_v28, %v1779_v35  ;;  %v965_v39 = vsel %vm924_vm0, %v260_v32, %v1781_v36  ;;  %v1787_v48 = vpop.permute.xlu0 %554  ;;  %v372_v28 = vld [vmem:[%s1613_s29 + $0xc0] sm:$0xff]  ;;  %v371_v32 = vld [vmem:[%s1613_s29 + $0xb8] sm:$0xff] }
  0xee   : > { %1154 = vst [vmem:[%s1423_s26 + $0x320] sm:$0xff] %v975_v38  ;;  %v964_v51 = vsel %vm924_vm0, %v259_v34, %v1787_v48  ;;  %v276_v34 = vld [vmem:[%s1411_s22 + $0x1c0] sm:$0xff]  ;;  %v266_v38 = vld [vmem:[%s1411_s22 + $0x170] sm:$0xff] }
  0xef   : > { %1134 = vst [vmem:[%s1423_s26 + $0x280] sm:$0xff] %v965_v39  ;;  %v265_v39 = vld [vmem:[%s1411_s22 + $0x168] sm:$0xff] }
  0xf0   : > { %1132 = vst [vmem:[%s1423_s26 + $0x270] sm:$0xff] %v964_v51 }
  0xf2   : > { %776 = vrot.lane.b32.xlu2 %v370_v53, %s1298_s19  ;;  %774 = vrot.lane.b32.xlu1 %v369_v54, %s1298_s19 }
  0xf3   : > { %772 = vrot.lane.b32.xlu0 %v368_v55, %s1298_s19 }
  0xf4   : > { %v1803_v3 = vpop.permute.xlu2 %582  ;;  %v1805_v12 = vpop.permute.xlu1 %562 }
  0xf5   : > { %2265 = vst [vmem:[#allocation2_spill] sm:$0xff] %v1803_v3  ;;  %v978_v13 = vsel %vm924_vm0, %v273_v60, %v1803_v3  ;;  %v968_v16 = vsel %vm924_vm0, %v263_v62, %v1805_v12  ;;  %v1811_v19 = vpop.permute.xlu0 %560  ;;  %v383_v3 = vld [vmem:[%s1613_s29 + $0x118] sm:$0xff] }
  0xf6   : > { %1160 = vst [vmem:[%s1423_s26 + $0x350] sm:$0xff] %v978_v13  ;;  %v967_v23 = vsel %vm924_vm0, %v262_v2, %v1811_v19  ;;  %v376_v2 = vld [vmem:[%s1613_s29 + $0xe0] sm:$0xff]  ;;  %v375_v13 = vld [vmem:[%s1613_s29 + $0xd8] sm:$0xff] }
  0xf7   : > { %1140 = vst [vmem:[%s1423_s26 + $0x2b0] sm:$0xff] %v968_v16  ;;  %v374_v16 = vld [vmem:[%s1613_s29 + $0xd0] sm:$0xff] }
  0xf8   : > { %1138 = vst [vmem:[%s1423_s26 + $0x2a0] sm:$0xff] %v967_v23  ;;  %v279_v23 = vld [vmem:[%s1411_s22 + $0x1d8] sm:$0xff] }
  0xfa   : > { %782 = vrot.lane.b32.xlu2 %v373_v24, %s1298_s19  ;;  %780 = vrot.lane.b32.xlu1 %v372_v28, %s1298_s19  ;;  %v269_v24 = vld [vmem:[%s1411_s22 + $0x188] sm:$0xff]  ;;  %v268_v28 = vld [vmem:[%s1411_s22 + $0x180] sm:$0xff] }
  0xfb   : > { %778 = vrot.lane.b32.xlu0 %v371_v32, %s1298_s19 }
  0xfc   : > { %v1827_v51 = vpop.permute.xlu2 %588  ;;  %v1829_v53 = vpop.permute.xlu1 %568 }
  0xfd   : > { %2266 = vst [vmem:[#allocation3_spill] sm:$0xff] %v1827_v51  ;;  %v981_v54 = vsel %vm924_vm0, %v276_v34, %v1827_v51  ;;  %v971_v55 = vsel %vm924_vm0, %v266_v38, %v1829_v53  ;;  %v1835_v60 = vpop.permute.xlu0 %566  ;;  %v380_v51 = vld [vmem:[%s1613_s29 + $0x100] sm:$0xff] }
  0xfe   : > { %1166 = vst [vmem:[%s1423_s26 + $0x380] sm:$0xff] %v981_v54  ;;  %v970_v62 = vsel %vm924_vm0, %v265_v39, %v1835_v60 }
  0xff   : > { %1146 = vst [vmem:[%s1423_s26 + $0x2e0] sm:$0xff] %v971_v55 }
 0x100   : > { %1144 = vst [vmem:[%s1423_s26 + $0x2d0] sm:$0xff] %v970_v62  ;;  %v379_v62 = vld [vmem:[%s1613_s29 + $0xf8] sm:$0xff] }
 0x102   : > { %788 = vrot.lane.b32.xlu2 %v376_v2, %s1298_s19  ;;  %786 = vrot.lane.b32.xlu1 %v375_v13, %s1298_s19  ;;  %v378_v2 = vld [vmem:[%s1613_s29 + $0xf0] sm:$0xff]  ;;  %v377_v13 = vld [vmem:[%s1613_s29 + $0xe8] sm:$0xff] }
 0x103   : > { %784 = vrot.lane.b32.xlu0 %v374_v16, %s1298_s19  ;;  %v282_v16 = vld [vmem:[%s1411_s22 + $0x1f0] sm:$0xff] }
 0x104   : > { %v1851_v32 = vpop.permute.xlu2 %594  ;;  %v1853_v34 = vpop.permute.xlu1 %574 }
 0x105   : > { %2267 = vst [vmem:[#allocation4_spill] sm:$0xff] %v1851_v32  ;;  %v984_v38 = vsel %vm924_vm0, %v279_v23, %v1851_v32  ;;  %v974_v39 = vsel %vm924_vm0, %v269_v24, %v1853_v34  ;;  %v1859_v54 = vpop.permute.xlu0 %572  ;;  %v272_v23 = vld [vmem:[%s1411_s22 + $0x1a0] sm:$0xff]  ;;  %v271_v24 = vld [vmem:[%s1411_s22 + $0x198] sm:$0xff]  ;;  %v381_v32 = vld [vmem:[%s1613_s29 + $0x108] sm:$0xff] }
 0x106   : > { %1172 = vst [vmem:[%s1423_s26 + $0x3b0] sm:$0xff] %v984_v38  ;;  %v973_v55 = vsel %vm924_vm0, %v268_v28, %v1859_v54 }
 0x107   : > { %1152 = vst [vmem:[%s1423_s26 + $0x310] sm:$0xff] %v974_v39 }
 0x108   : > { %1150 = vst [vmem:[%s1423_s26 + $0x300] sm:$0xff] %v973_v55 }
 0x10a   : > { %794 = vrot.lane.b32.xlu2 %v379_v62, %s1298_s19  ;;  %792 = vrot.lane.b32.xlu1 %v378_v2, %s1298_s19 }
 0x10b   : > { %790 = vrot.lane.b32.xlu0 %v377_v13, %s1298_s19  ;;  %v382_v13 = vld [vmem:[%s1613_s29 + $0x110] sm:$0xff] }
 0x10c   : > { %v1875_v28 = vpop.permute.xlu2 %600  ;;  %v1877_v38 = vpop.permute.xlu1 %580 }
 0x10d   : > { %2268 = vst [vmem:[#allocation5_spill] sm:$0xff] %v1875_v28  ;;  %v987_v39 = vsel %vm924_vm0, %v282_v16, %v1875_v28  ;;  %v977_v55 = vsel %vm924_vm0, %v272_v23, %v1877_v38  ;;  %v1883_v62 = vpop.permute.xlu0 %578  ;;  %v275_v16 = vld [vmem:[%s1411_s22 + $0x1b8] sm:$0xff]  ;;  %v274_v23 = vld [vmem:[%s1411_s22 + $0x1b0] sm:$0xff]  ;;  %v384_v28 = vld [vmem:[%s1613_s29 + $0x120] sm:$0xff] }
 0x10e   : > { %1178 = vst [vmem:[%s1423_s26 + $0x3e0] sm:$0xff] %v987_v39  ;;  %v976_v2 = vsel %vm924_vm0, %v271_v24, %v1883_v62 }
 0x10f   : > { %1158 = vst [vmem:[%s1423_s26 + $0x340] sm:$0xff] %v977_v55 }
 0x110   : > { %1156 = vst [vmem:[%s1423_s26 + $0x330] sm:$0xff] %v976_v2 }
 0x112   : > { %800 = vrot.lane.b32.xlu2 %v382_v13, %s1298_s19  ;;  %798 = vrot.lane.b32.xlu1 %v381_v32, %s1298_s19  ;;  %v385_v32 = vld [vmem:[%s1613_s29 + $0x128] sm:$0xff] }
 0x113   : > { %796 = vrot.lane.b32.xlu0 %v380_v51, %s1298_s19 }
 0x114   : > { %v735_v24 = vpop.permute.xlu2 %734  ;;  %v1898_v39 = vpop.permute.xlu1 %586 }
 0x115   : > { %v990_v55 = vsel %vm924_vm0, %v1493_v9, %v735_v24  ;;  %v980_v2 = vsel %vm924_vm0, %v275_v16, %v1898_v39  ;;  %v1904_v13 = vpop.permute.xlu0 %584  ;;  %v278_v9 = vld [vmem:[%s1411_s22 + $0x1d0] sm:$0xff]  ;;  %v277_v16 = vld [vmem:[%s1411_s22 + $0x1c8] sm:$0xff] }
 0x116   : > { %2269 = vst [vmem:[#allocation6_spill] sm:$0xff] %v1904_v13  ;;  %v979_v51 = vsel %vm924_vm0, %v274_v23, %v1904_v13  ;;  %v386_v13 = vld [vmem:[%s1613_s29 + $0x130] sm:$0xff] }
 0x117   : > { %1057 = vst.msk [vmem:[%s1423_s26 + $0x18] sm:$0xff] %vm1054_vm1, %v990_v55 }
 0x118   : > { %1164 = vst [vmem:[%s1423_s26 + $0x370] sm:$0xff] %v980_v2 }
 0x119   : > { %1162 = vst [vmem:[%s1423_s26 + $0x360] sm:$0xff] %v979_v51 }
 0x11a   : > { %806 = vrot.lane.b32.xlu2 %v385_v32, %s1298_s19  ;;  %804 = vrot.lane.b32.xlu1 %v384_v28, %s1298_s19  ;;  %v387_v32 = vld [vmem:[%s1613_s29 + $0x138] sm:$0xff] }
 0x11b   : > { %802 = vrot.lane.b32.xlu0 %v383_v3, %s1298_s19  ;;  %v388_v3 = vld [vmem:[%s1613_s29 + $0x140] sm:$0xff] }
 0x11c   : > { %v741_v23 = vpop.permute.xlu2 %740  ;;  %v1920_v24 = vpop.permute.xlu1 %592 }
 0x11d   : > { %v993_v55 = vsel %vm924_vm0, %v1418_v37, %v741_v23  ;;  %v983_v2 = vsel %vm924_vm0, %v278_v9, %v1920_v24  ;;  %v1926_v51 = vpop.permute.xlu0 %590  ;;  %v281_v37 = vld [vmem:[%s1411_s22 + $0x1e8] sm:$0xff]  ;;  %v280_v9 = vld [vmem:[%s1411_s22 + $0x1e0] sm:$0xff] }
 0x11e   : > { %1063 = vst.msk [vmem:[%s1423_s26 + $0x48] sm:$0xff] %vm1054_vm1, %v993_v55  ;;  %v982_v28 = vsel %vm924_vm0, %v277_v16, %v1926_v51 }
 0x11f   : > { %1170 = vst [vmem:[%s1423_s26 + $0x3a0] sm:$0xff] %v983_v2 }
 0x120   : > { %1168 = vst [vmem:[%s1423_s26 + $0x390] sm:$0xff] %v982_v28 }
 0x122   : > { %812 = vrot.lane.b32.xlu2 %v388_v3, %s1298_s19  ;;  %810 = vrot.lane.b32.xlu1 %v387_v32, %s1298_s19  ;;  %v390_v32 = vld [vmem:[%s1613_s29 + $0x150] sm:$0xff] }
 0x123   : > { %808 = vrot.lane.b32.xlu0 %v386_v13, %s1298_s19  ;;  %v391_v13 = vld [vmem:[%s1613_s29 + $0x158] sm:$0xff] }
 0x124   : > { %v747_v16 = vpop.permute.xlu2 %746  ;;  %v1942_v23 = vpop.permute.xlu1 %598 }
 0x125   : > { %v996_v55 = vsel %vm924_vm0, %v1511_v18, %v747_v16  ;;  %v986_v2 = vsel %vm924_vm0, %v281_v37, %v1942_v23  ;;  %v1948_v28 = vpop.permute.xlu0 %596  ;;  %v389_v18 = vld [vmem:[%s1613_s29 + $0x148] sm:$0xff]  ;;  %v283_v37 = vld [vmem:[%s1411_s22 + $0x1f8] sm:$0xff] }
 0x126   : > { %2270 = vst [vmem:[#allocation7_spill] sm:$0xff] %v1948_v28  ;;  %v985_v3 = vsel %vm924_vm0, %v280_v9, %v1948_v28 }
 0x127   : > { %1069 = vst.msk [vmem:[%s1423_s26 + $0x78] sm:$0xff] %vm1054_vm1, %v996_v55 }
 0x128   : > { %1176 = vst [vmem:[%s1423_s26 + $0x3d0] sm:$0xff] %v986_v2 }
 0x129   : > { %1174 = vst [vmem:[%s1423_s26 + $0x3c0] sm:$0xff] %v985_v3 }
 0x12a   : > { %818 = vrot.lane.b32.xlu2 %v391_v13, %s1298_s19  ;;  %816 = vrot.lane.b32.xlu1 %v390_v32, %s1298_s19  ;;  %v394_v13 = vld [vmem:[%s1613_s29 + $0x170] sm:$0xff]  ;;  %v393_v32 = vld [vmem:[%s1613_s29 + $0x168] sm:$0xff] }
 0x12b   : > { %814 = vrot.lane.b32.xlu0 %v389_v18, %s1298_s19 }
 0x12c   : > { %v753_v16 = vpop.permute.xlu2 %752  ;;  %v733_v55 = vpop.permute.xlu1 %732 }
 0x12d   : > { %v999_v9 = vsel %vm924_vm0, %v1535_v30, %v753_v16  ;;  %v989_v2 = vsel %vm924_vm0, %v1469_v61, %v733_v55  ;;  %v1967_v28 = vpop.permute.xlu0 %602  ;;  %v392_v30 = vld [vmem:[%s1613_s29 + $0x160] sm:$0xff] }
 0x12e   : > { %1075 = vst.msk [vmem:[%s1423_s26 + $0xa8] sm:$0xff] %vm1054_vm1, %v999_v9  ;;  %v988_v3 = vsel %vm924_vm0, %v283_v37, %v1967_v28 }
 0x12f   : > { %1055 = vst.msk [vmem:[%s1423_s26 + $0x8] sm:$0xff] %vm1054_vm1, %v989_v2  ;;  %v397_v2 = vld [vmem:[%s1613_s29 + $0x188] sm:$0xff] }
 0x130   : > { %1180 = vst [vmem:[%s1423_s26 + $0x3f0] sm:$0xff] %v988_v3  ;;  %v396_v3 = vld [vmem:[%s1613_s29 + $0x180] sm:$0xff] }
 0x132   : > { %824 = vrot.lane.b32.xlu2 %v394_v13, %s1298_s19  ;;  %822 = vrot.lane.b32.xlu1 %v393_v32, %s1298_s19 }
 0x133   : > { %820 = vrot.lane.b32.xlu0 %v392_v30, %s1298_s19 }
 0x134   : > { %v759_v61 = vpop.permute.xlu2 %758  ;;  %v739_v18 = vpop.permute.xlu1 %738 }
 0x135   : > { %v1002_v37 = vsel %vm924_vm0, %v1559_v44, %v759_v61  ;;  %v992_v16 = vsel %vm924_vm0, %v1487_v6, %v739_v18  ;;  %v737_v55 = vpop.permute.xlu0 %736  ;;  %v395_v44 = vld [vmem:[%s1613_s29 + $0x178] sm:$0xff]  ;;  %v400_v18 = vld [vmem:[%s1613_s29 + $0x1a0] sm:$0xff] }
 0x136   : > { %1081 = vst.msk [vmem:[%s1423_s26 + $0xd8] sm:$0xff] %vm1054_vm1, %v1002_v37  ;;  %v991_v9 = vsel %vm924_vm0, %v1463_v58, %v737_v55  ;;  %v399_v37 = vld [vmem:[%s1613_s29 + $0x198] sm:$0xff] }
 0x137   : > { %1061 = vst.msk [vmem:[%s1423_s26 + $0x38] sm:$0xff] %vm1054_vm1, %v992_v16 }
 0x138   : > { %1059 = vst.msk [vmem:[%s1423_s26 + $0x28] sm:$0xff] %vm1054_vm1, %v991_v9 }
 0x13a   : > { %830 = vrot.lane.b32.xlu2 %v397_v2, %s1298_s19  ;;  %828 = vrot.lane.b32.xlu1 %v396_v3, %s1298_s19  ;;  %v403_v3 = vld [vmem:[%s1613_s29 + $0x1b8] sm:$0xff] }
 0x13b   : > { %826 = vrot.lane.b32.xlu0 %v395_v44, %s1298_s19  ;;  %v402_v44 = vld [vmem:[%s1613_s29 + $0x1b0] sm:$0xff] }
 0x13c   : > { %v765_v6 = vpop.permute.xlu2 %764  ;;  %v745_v58 = vpop.permute.xlu1 %744 }
 0x13d   : > { %v1005_v13 = vsel %vm924_vm0, %v1583_v59, %v765_v6  ;;  %v995_v32 = vsel %vm924_vm0, %v1517_v21, %v745_v58  ;;  %v743_v30 = vpop.permute.xlu0 %742  ;;  %v398_v59 = vld [vmem:[%s1613_s29 + $0x190] sm:$0xff] }
 0x13e   : > { %1087 = vst.msk [vmem:[%s1423_s26 + $0x108] sm:$0xff] %vm1054_vm1, %v1005_v13  ;;  %v994_v61 = vsel %vm924_vm0, %v1435_v43, %v743_v30  ;;  %v406_v30 = vld [vmem:[%s1613_s29 + $0x1d0] sm:$0xff] }
 0x13f   : > { %1067 = vst.msk [vmem:[%s1423_s26 + $0x68] sm:$0xff] %vm1054_vm1, %v995_v32 }
 0x140   : > { %1065 = vst.msk [vmem:[%s1423_s26 + $0x58] sm:$0xff] %vm1054_vm1, %v994_v61  ;;  %v405_v61 = vld [vmem:[%s1613_s29 + $0x1c8] sm:$0xff] }
 0x142   : > { %836 = vrot.lane.b32.xlu2 %v400_v18, %s1298_s19  ;;  %834 = vrot.lane.b32.xlu1 %v399_v37, %s1298_s19 }
 0x143   : > { %832 = vrot.lane.b32.xlu0 %v398_v59, %s1298_s19 }
 0x144   : > { %v771_v21 = vpop.permute.xlu2 %770  ;;  %v751_v43 = vpop.permute.xlu1 %750 }
 0x145   : > { %v1008_v16 = vsel %vm924_vm0, %v1607_v11, %v771_v21  ;;  %v998_v55 = vsel %vm924_vm0, %v1541_v33, %v751_v43  ;;  %v749_v9 = vpop.permute.xlu0 %748  ;;  %v401_v11 = vld [vmem:[%s1613_s29 + $0x1a8] sm:$0xff] }
 0x146   : > { %1093 = vst.msk [vmem:[%s1423_s26 + $0x138] sm:$0xff] %vm1054_vm1, %v1008_v16  ;;  %v997_v2 = vsel %vm924_vm0, %v1447_v49, %v749_v9  ;;  %v409_v43 = vld [vmem:[%s1613_s29 + $0x1e8] sm:$0xff]  ;;  %v408_v16 = vld [vmem:[%s1613_s29 + $0x1e0] sm:$0xff] }
 0x147   : > { %1073 = vst.msk [vmem:[%s1423_s26 + $0x98] sm:$0xff] %vm1054_vm1, %v998_v55 }
 0x148   : > { %1071 = vst.msk [vmem:[%s1423_s26 + $0x88] sm:$0xff] %vm1054_vm1, %v997_v2 }
 0x14a   : > { %842 = vrot.lane.b32.xlu2 %v403_v3, %s1298_s19  ;;  %840 = vrot.lane.b32.xlu1 %v402_v44, %s1298_s19  ;;  %v411_v44 = vld [vmem:[%s1613_s29 + $0x1f8] sm:$0xff] }
 0x14b   : > { %838 = vrot.lane.b32.xlu0 %v401_v11, %s1298_s19  ;;  %v410_v11 = vld [vmem:[%s1613_s29 + $0x1f0] sm:$0xff] }
 0x14c   : > { %v777_v33 = vpop.permute.xlu2 %776  ;;  %v757_v49 = vpop.permute.xlu1 %756 }
 0x14d   : > { %v1011_v6 = vsel %vm924_vm0, %v1637_v26, %v777_v33  ;;  %v1001_v58 = vsel %vm924_vm0, %v1565_v47, %v757_v49  ;;  %v755_v13 = vpop.permute.xlu0 %754  ;;  %v404_v26 = vld [vmem:[%s1613_s29 + $0x1c0] sm:$0xff] }
 0x14e   : > { %1099 = vst.msk [vmem:[%s1423_s26 + $0x168] sm:$0xff] %vm1054_vm1, %v1011_v6  ;;  %v1000_v32 = vsel %vm924_vm0, %v1461_v57, %v755_v13 }
 0x14f   : > { %1079 = vst.msk [vmem:[%s1423_s26 + $0xc8] sm:$0xff] %vm1054_vm1, %v1001_v58 }
 0x150   : > { %1077 = vst.msk [vmem:[%s1423_s26 + $0xb8] sm:$0xff] %vm1054_vm1, %v1000_v32 }
 0x152   : > { %848 = vrot.lane.b32.xlu2 %v406_v30, %s1298_s19  ;;  %846 = vrot.lane.b32.xlu1 %v405_v61, %s1298_s19 }
 0x153   : > { %844 = vrot.lane.b32.xlu0 %v404_v26, %s1298_s19 }
 0x154   : > { %v783_v47 = vpop.permute.xlu2 %782  ;;  %v763_v57 = vpop.permute.xlu1 %762 }
 0x155   : > { %v1014_v18 = vsel %vm924_vm0, %v1661_v45, %v783_v47  ;;  %v1004_v37 = vsel %vm924_vm0, %v1589_v63, %v763_v57  ;;  %v761_v59 = vpop.permute.xlu0 %760  ;;  %v407_v45 = vld [vmem:[%s1613_s29 + $0x1d8] sm:$0xff] }
 0x156   : > { %1105 = vst.msk [vmem:[%s1423_s26 + $0x198] sm:$0xff] %vm1054_vm1, %v1014_v18  ;;  %v1003_v21 = vsel %vm924_vm0, %v1485_v5, %v761_v59 }
 0x157   : > { %1085 = vst.msk [vmem:[%s1423_s26 + $0xf8] sm:$0xff] %vm1054_vm1, %v1004_v37 }
 0x158   : > { %1083 = vst.msk [vmem:[%s1423_s26 + $0xe8] sm:$0xff] %vm1054_vm1, %v1003_v21 }
 0x15a   : > { %854 = vrot.lane.b32.xlu2 %v409_v43, %s1298_s19  ;;  %852 = vrot.lane.b32.xlu1 %v408_v16, %s1298_s19 }
 0x15b   : > { %850 = vrot.lane.b32.xlu0 %v407_v45, %s1298_s19 }
 0x15c   : > { %v789_v63 = vpop.permute.xlu2 %788  ;;  %v769_v55 = vpop.permute.xlu1 %768 }
 0x15d   : > { %v1017_v5 = vsel %vm924_vm0, %v1685_v1, %v789_v63  ;;  %v1007_v9 = vsel %vm924_vm0, %v1619_v14, %v769_v55  ;;  %v767_v2 = vpop.permute.xlu0 %766 }
 0x15e   : > { %1111 = vst.msk [vmem:[%s1423_s26 + $0x1c8] sm:$0xff] %vm1054_vm1, %v1017_v5  ;;  %v1006_v3 = vsel %vm924_vm0, %v1509_v17, %v767_v2 }
 0x15f   : > { %1091 = vst.msk [vmem:[%s1423_s26 + $0x128] sm:$0xff] %vm1054_vm1, %v1007_v9 }
 0x160   : > { %1089 = vst.msk [vmem:[%s1423_s26 + $0x118] sm:$0xff] %vm1054_vm1, %v1006_v3 }
 0x162   : > { %858 = vrot.lane.b32.xlu1 %v411_v44, %s1298_s19 }
 0x163   : > { %856 = vrot.lane.b32.xlu0 %v410_v11, %s1298_s19 }
 0x164   : > { %v795_v14 = vpop.permute.xlu2 %794  ;;  %v775_v1 = vpop.permute.xlu1 %774 }
 0x165   : > { %v1020_v33 = vsel %vm924_vm0, %v1709_v22, %v795_v14  ;;  %v1010_v17 = vsel %vm924_vm0, %v1643_v31, %v775_v1  ;;  %v773_v49 = vpop.permute.xlu0 %772 }
 0x166   : > { %1117 = vst.msk [vmem:[%s1423_s26 + $0x1f8] sm:$0xff] %vm1054_vm1, %v1020_v33  ;;  %v1009_v6 = vsel %vm924_vm0, %v1533_v29, %v773_v49 }
 0x167   : > { %1097 = vst.msk [vmem:[%s1423_s26 + $0x158] sm:$0xff] %vm1054_vm1, %v1010_v17 }
 0x168   : > { %1095 = vst.msk [vmem:[%s1423_s26 + $0x148] sm:$0xff] %vm1054_vm1, %v1009_v6 }
 0x16c   : > { %v801_v58 = vpop.permute.xlu2 %800  ;;  %v781_v13 = vpop.permute.xlu1 %780 }
 0x16d   : > { %v1023_v22 = vsel %vm924_vm0, %v1733_v46, %v801_v58  ;;  %v1013_v31 = vsel %vm924_vm0, %v1667_v50, %v781_v13  ;;  %v779_v32 = vpop.permute.xlu0 %778 }
 0x16e   : > { %1123 = vst.msk [vmem:[%s1423_s26 + $0x228] sm:$0xff] %vm1054_vm1, %v1023_v22  ;;  %v1012_v29 = vsel %vm924_vm0, %v1557_v42, %v779_v32  ;;  %v2271_v22 = vld [vmem:[#allocation6_spill] sm:$0xff] }
 0x16f   : > { %1103 = vst.msk [vmem:[%s1423_s26 + $0x188] sm:$0xff] %vm1054_vm1, %v1013_v31 }
 0x170   : > { %1101 = vst.msk [vmem:[%s1423_s26 + $0x178] sm:$0xff] %vm1054_vm1, %v1012_v29 }
 0x174   : > { %v807_v30 = vpop.permute.xlu2 %806  ;;  %v787_v61 = vpop.permute.xlu1 %786 }
 0x175   : > { %v1026_v46 = vsel %vm924_vm0, %v1757_v8, %v807_v30  ;;  %v1016_v50 = vsel %vm924_vm0, %v1691_v4, %v787_v61  ;;  %v785_v26 = vpop.permute.xlu0 %784  ;;  %v2273_v61 = vld [vmem:[#allocation3_spill] sm:$0xff] }
 0x176   : > { %1129 = vst.msk [vmem:[%s1423_s26 + $0x258] sm:$0xff] %vm1054_vm1, %v1026_v46  ;;  %v1015_v42 = vsel %vm924_vm0, %v1581_v56, %v785_v26  ;;  %v2274_v26 = vld [vmem:[#allocation7_spill] sm:$0xff] }
 0x177   : > { %1109 = vst.msk [vmem:[%s1423_s26 + $0x1b8] sm:$0xff] %vm1054_vm1, %v1016_v50 }
 0x178   : > { %1107 = vst.msk [vmem:[%s1423_s26 + $0x1a8] sm:$0xff] %vm1054_vm1, %v1015_v42 }
 0x17c   : > { %v813_v47 = vpop.permute.xlu2 %812  ;;  %v793_v57 = vpop.permute.xlu1 %792 }
 0x17d   : > { %v1029_v8 = vsel %vm924_vm0, %v1781_v36, %v813_v47  ;;  %v1019_v4 = vsel %vm924_vm0, %v1715_v27, %v793_v57  ;;  %v791_v18 = vpop.permute.xlu0 %790  ;;  %v2275_v57 = vld [vmem:[#allocation4_spill] sm:$0xff] }
 0x17e   : > { %1135 = vst.msk [vmem:[%s1423_s26 + $0x288] sm:$0xff] %vm1054_vm1, %v1029_v8  ;;  %v1018_v56 = vsel %vm924_vm0, %v1605_v10, %v791_v18 }
 0x17f   : > { %1115 = vst.msk [vmem:[%s1423_s26 + $0x1e8] sm:$0xff] %vm1054_vm1, %v1019_v4 }
 0x180   : > { %1113 = vst.msk [vmem:[%s1423_s26 + $0x1d8] sm:$0xff] %vm1054_vm1, %v1018_v56  ;;  %v2276_v56 = vld [vmem:[#allocation5_spill] sm:$0xff] }
 0x184   : > { %v819_v37 = vpop.permute.xlu2 %818  ;;  %v799_v59 = vpop.permute.xlu1 %798 }
 0x185   : > { %v1032_v36 = vsel %vm924_vm0, %v1805_v12, %v819_v37  ;;  %v1022_v27 = vsel %vm924_vm0, %v1739_v52, %v799_v59  ;;  %v797_v21 = vpop.permute.xlu0 %796 }
 0x186   : > { %1141 = vst.msk [vmem:[%s1423_s26 + $0x2b8] sm:$0xff] %vm1054_vm1, %v1032_v36  ;;  %v1021_v10 = vsel %vm924_vm0, %v1635_v25, %v797_v21 }
 0x187   : > { %1121 = vst.msk [vmem:[%s1423_s26 + $0x218] sm:$0xff] %vm1054_vm1, %v1022_v27 }
 0x188   : > { %1119 = vst.msk [vmem:[%s1423_s26 + $0x208] sm:$0xff] %vm1054_vm1, %v1021_v10 }
 0x18c   : > { %v825_v43 = vpop.permute.xlu2 %824  ;;  %v805_v16 = vpop.permute.xlu1 %804 }
 0x18d   : > { %v1035_v12 = vsel %vm924_vm0, %v1829_v53, %v825_v43  ;;  %v1025_v52 = vsel %vm924_vm0, %v1763_v15, %v805_v16  ;;  %v803_v45 = vpop.permute.xlu0 %802 }
 0x18e   : > { %1147 = vst.msk [vmem:[%s1423_s26 + $0x2e8] sm:$0xff] %vm1054_vm1, %v1035_v12  ;;  %v1024_v25 = vsel %vm924_vm0, %v1659_v41, %v803_v45 }
 0x18f   : > { %1127 = vst.msk [vmem:[%s1423_s26 + $0x248] sm:$0xff] %vm1054_vm1, %v1025_v52 }
 0x190   : > { %1125 = vst.msk [vmem:[%s1423_s26 + $0x238] sm:$0xff] %vm1054_vm1, %v1024_v25 }
 0x194   : > { %v831_v63 = vpop.permute.xlu2 %830  ;;  %v811_v55 = vpop.permute.xlu1 %810 }
 0x195   : > { %v1038_v53 = vsel %vm924_vm0, %v1853_v34, %v831_v63  ;;  %v1028_v15 = vsel %vm924_vm0, %v1787_v48, %v811_v55  ;;  %v809_v5 = vpop.permute.xlu0 %808 }
 0x196   : > { %1153 = vst.msk [vmem:[%s1423_s26 + $0x318] sm:$0xff] %vm1054_vm1, %v1038_v53  ;;  %v1027_v41 = vsel %vm924_vm0, %v1683_v0, %v809_v5 }
 0x197   : > { %1133 = vst.msk [vmem:[%s1423_s26 + $0x278] sm:$0xff] %vm1054_vm1, %v1028_v15 }
 0x198   : > { %1131 = vst.msk [vmem:[%s1423_s26 + $0x268] sm:$0xff] %vm1054_vm1, %v1027_v41 }
 0x19c   : > { %v837_v9 = vpop.permute.xlu2 %836  ;;  %v817_v2 = vpop.permute.xlu1 %816 }
 0x19d   : > { %v1041_v34 = vsel %vm924_vm0, %v1877_v38, %v837_v9  ;;  %v1031_v48 = vsel %vm924_vm0, %v1811_v19, %v817_v2  ;;  %v815_v3 = vpop.permute.xlu0 %814 }
 0x19e   : > { %1159 = vst.msk [vmem:[%s1423_s26 + $0x348] sm:$0xff] %vm1054_vm1, %v1041_v34  ;;  %v1030_v0 = vsel %vm924_vm0, %v1707_v20, %v815_v3 }
 0x19f   : > { %1139 = vst.msk [vmem:[%s1423_s26 + $0x2a8] sm:$0xff] %vm1054_vm1, %v1031_v48 }
 0x1a0   : > { %1137 = vst.msk [vmem:[%s1423_s26 + $0x298] sm:$0xff] %vm1054_vm1, %v1030_v0 }
 0x1a4   : > { %v843_v44 = vpop.permute.xlu2 %842  ;;  %v823_v11 = vpop.permute.xlu1 %822 }
 0x1a5   : > { %v1044_v38 = vsel %vm924_vm0, %v1898_v39, %v843_v44  ;;  %v1034_v19 = vsel %vm924_vm0, %v1835_v60, %v823_v11  ;;  %v821_v14 = vpop.permute.xlu0 %820 }
 0x1a6   : > { %1165 = vst.msk [vmem:[%s1423_s26 + $0x378] sm:$0xff] %vm1054_vm1, %v1044_v38  ;;  %v1033_v20 = vsel %vm924_vm0, %v1731_v40, %v821_v14 }
 0x1a7   : > { %1145 = vst.msk [vmem:[%s1423_s26 + $0x2d8] sm:$0xff] %vm1054_vm1, %v1034_v19 }
 0x1a8   : > { %1143 = vst.msk [vmem:[%s1423_s26 + $0x2c8] sm:$0xff] %vm1054_vm1, %v1033_v20 }
 0x1ac   : > { %v849_v1 = vpop.permute.xlu2 %848  ;;  %v829_v33 = vpop.permute.xlu1 %828 }
 0x1ad   : > { %v1047_v39 = vsel %vm924_vm0, %v1920_v24, %v849_v1  ;;  %v1037_v60 = vsel %vm924_vm0, %v1859_v54, %v829_v33  ;;  %v827_v17 = vpop.permute.xlu0 %826 }
 0x1ae   : > { %1171 = vst.msk [vmem:[%s1423_s26 + $0x3a8] sm:$0xff] %vm1054_vm1, %v1047_v39  ;;  %v1036_v40 = vsel %vm924_vm0, %v1755_v7, %v827_v17 }
 0x1af   : > { %1151 = vst.msk [vmem:[%s1423_s26 + $0x308] sm:$0xff] %vm1054_vm1, %v1037_v60 }
 0x1b0   : > { %1149 = vst.msk [vmem:[%s1423_s26 + $0x2f8] sm:$0xff] %vm1054_vm1, %v1036_v40 }
 0x1b4   : > { %v855_v49 = vpop.permute.xlu2 %854  ;;  %v835_v6 = vpop.permute.xlu1 %834 }
 0x1b5   : > { %v1050_v24 = vsel %vm924_vm0, %v1942_v23, %v855_v49  ;;  %v1040_v54 = vsel %vm924_vm0, %v1883_v62, %v835_v6  ;;  %v833_v58 = vpop.permute.xlu0 %832  ;;  %v2272_v62 = vld [vmem:[#allocation2_spill] sm:$0xff] }
 0x1b6   : > { %1177 = vst.msk [vmem:[%s1423_s26 + $0x3d8] sm:$0xff] %vm1054_vm1, %v1050_v24  ;;  %v1039_v7 = vsel %vm924_vm0, %v1779_v35, %v833_v58 }
 0x1b7   : > { %1157 = vst.msk [vmem:[%s1423_s26 + $0x338] sm:$0xff] %vm1054_vm1, %v1040_v54 }
 0x1b8   : > { %1155 = vst.msk [vmem:[%s1423_s26 + $0x328] sm:$0xff] %vm1054_vm1, %v1039_v7 }
 0x1bc   : > { %v841_v13 = vpop.permute.xlu1 %840 }
 0x1bd   : > { %v1043_v23 = vsel %vm924_vm0, %v2271_v22, %v841_v13  ;;  %v839_v31 = vpop.permute.xlu0 %838 }
 0x1be   : > { %1163 = vst.msk [vmem:[%s1423_s26 + $0x368] sm:$0xff] %vm1054_vm1, %v1043_v23  ;;  %v1042_v32 = vsel %vm924_vm0, %v2272_v62, %v839_v31 }
 0x1bf   : > { %1161 = vst.msk [vmem:[%s1423_s26 + $0x358] sm:$0xff] %vm1054_vm1, %v1042_v32 }
 0x1c4   : > { %v847_v35 = vpop.permute.xlu1 %846 }
 0x1c5   : > { %v1046_v29 = vsel %vm924_vm0, %v1926_v51, %v847_v35  ;;  %v845_v30 = vpop.permute.xlu0 %844 }
 0x1c6   : > { %1169 = vst.msk [vmem:[%s1423_s26 + $0x398] sm:$0xff] %vm1054_vm1, %v1046_v29  ;;  %v1045_v46 = vsel %vm924_vm0, %v2273_v61, %v845_v30 }
 0x1c7   : > { %1167 = vst.msk [vmem:[%s1423_s26 + $0x388] sm:$0xff] %vm1054_vm1, %v1045_v46 }
 0x1cc   : > { %v853_v50 = vpop.permute.xlu1 %852 }
 0x1cd   : > { %v1049_v42 = vsel %vm924_vm0, %v2274_v26, %v853_v50  ;;  %v851_v47 = vpop.permute.xlu0 %850 }
 0x1ce   : > { %1175 = vst.msk [vmem:[%s1423_s26 + $0x3c8] sm:$0xff] %vm1054_vm1, %v1049_v42  ;;  %v1048_v8 = vsel %vm924_vm0, %v2275_v57, %v851_v47 }
 0x1cf   : > { %1173 = vst.msk [vmem:[%s1423_s26 + $0x3b8] sm:$0xff] %vm1054_vm1, %v1048_v8 }
 0x1d4   : > { %v859_v51 = vpop.permute.xlu1 %858 }
 0x1d5   : > { %v1052_v4 = vsel %vm924_vm0, %v1967_v28, %v859_v51  ;;  %v857_v18 = vpop.permute.xlu0 %856 }
 0x1d6   : > { %1181 = vst.msk [vmem:[%s1423_s26 + $0x3f8] sm:$0xff] %vm1054_vm1, %v1052_v4  ;;  %v1051_v37 = vsel %vm924_vm0, %v2276_v56, %v857_v18 }
 0x1d7   : > { %1179 = vst.msk [vmem:[%s1423_s26 + $0x3e8] sm:$0xff] %vm1054_vm1, %v1051_v37 }
 0x1d8 PF: > { %s13_s12 = sadd.s32 1, %s1296_s12  }
 0x1d9   : > { %p10_p4 = scmp.ge.s32.totalorder %s13_s12, 6  }
 0x1db   :  { %12 = sbr.rel (!%p10_p4) target bundleno = 1 (0x1), region = 68 }

</bundles_post_ra>
